<compile_context>
chip_gen: v5e
topology: v5e:2x2
jax: 0.10.0
libtpu: 0.0.40
codegen_flags: <defaults>
</compile_context>

<pallas_src>
import jax
import jax.numpy as jnp
from jax.experimental import pallas as pl
from jax.experimental.pallas import tpu as pltpu

_GROUP = 128  # samples packed per lane-row -> every block minor dim is a multiple of 128


def _round_up(x: int, m: int) -> int:
    return ((x + m - 1) // m) * m


def prepare_params(weight, bias, *, group=_GROUP):
    """One-time parameter-init layout prep (NOT done per forward call).

    weight: [C, F] float32 (native PyTorch nn.Linear layout)
    bias:   [C]    float32
    Returns:
      w_big: [F*group, C*group] block-diagonal replication of weight.T
             (w_big[g*F + f, g*C + c] = weight[c, f], zero elsewhere)
      b_big: [1, C*group]       bias tiled `group` times
    """
    c, f = weight.shape
    eye = jnp.eye(group, dtype=weight.dtype)
    w_big = jnp.einsum("gh,cf->gfhc", eye, weight).reshape(group * f, group * c)
    b_big = jnp.tile(bias.astype(weight.dtype), group)[None, :]
    return w_big, b_big


def _packed_linear_kernel(x_ref, w_ref, b_ref, o_ref):
    """o = x_packed @ W_blockdiag + b_tiled  -- one lane-dense MXU matmul.

    x_ref: VMEM [tile_r, G*F]   (G samples per row, F features interleaved)
    w_ref: VMEM [G*F,  G*C]     (grid-invariant, built once at param init)
    b_ref: VMEM [1,    G*C]     (grid-invariant)
    o_ref: VMEM [tile_r, G*C]   (G samples per row, C logits interleaved)
    """
    # Single dense store of the whole tile (no per-class partial stores); the
    # 4->3 contraction rides the otherwise-idle MXU so the VALU never becomes
    # the binding VLIW slot once the DMA side is efficient.
    o_ref[...] = (
        jnp.dot(x_ref[...], w_ref[...], preferred_element_type=jnp.float32)
        + b_ref[...]
    ).astype(o_ref.dtype)


def softmax_classifier_forward(x, w_big, b_big, *, tile_rows=1024):
    """Logits = x @ weight.T + bias.   x: [N, F] f32  ->  [N, C] f32."""
    n, f = x.shape
    g = w_big.shape[0] // f
    c = w_big.shape[1] // g

    n_pad = _round_up(n, g)
    if n_pad != n:
        # TODO(synk): keep the batch a multiple of 128 upstream (or carry the
        # packed layout through the surrounding graph) so this tail-pad copy
        # pass disappears entirely.
        x = jnp.pad(x, ((0, n_pad - n), (0, 0)))
    rows = n_pad // g

    # Contiguous row-major reshape: pure metadata / bitcast, no HBM pass.
    x_packed = x.reshape(rows, g * f)

    # Big tiles to amortize the ~0.35 us per-grid-step overhead, but keep >=2
    # grid steps when there is enough work so both v7x TensorCores get a share.
    tile_r = min(tile_rows, _round_up(rows, 8))
    if rows > 8 and pl.cdiv(rows, tile_r) < 2:
        tile_r = _round_up(pl.cdiv(rows, 2), 8)
    grid = (pl.cdiv(rows, tile_r),)

    out_packed = pl.pallas_call(
        _packed_linear_kernel,
        out_shape=jax.ShapeDtypeStruct((rows, g * c), jnp.float32),
        grid=grid,
        in_specs=[
            pl.BlockSpec((tile_r, g * f), lambda i: (i, 0)),   # activations
            pl.BlockSpec((g * f, g * c), lambda i: (0, 0)),    # grid-invariant weights
            pl.BlockSpec((1, g * c), lambda i: (0, 0)),        # grid-invariant bias
        ],
        out_specs=pl.BlockSpec((tile_r, g * c), lambda i: (i, 0)),
        compiler_params=pltpu.CompilerParams(
            dimension_semantics=("parallel",),      # shard row-tiles across TCs
            vmem_limit_bytes=32 * 1024 * 1024,      # > v5e's 16 MiB default scoped VMEM
        ),
    )(x_packed, w_big, b_big)

    # Packed [rows, G*C] row-major == [rows*G, C] row-major: free reshape back.
    out = out_packed.reshape(n_pad, c)
    # TODO(synk): at training time, fuse the downstream log-softmax /
    # cross-entropy into the kernel epilogue (exp on the idle EUP slot) instead
    # of returning raw logits; forward() returns logits to match the module.
    return out if n_pad == n else out[:n]


if __name__ == "__main__":
    key = jax.random.PRNGKey(0)
    k_x, k_x2, k_w, k_b = jax.random.split(key, 4)

    N, F, C = 256, 4, 3
    # Demo data is quantized onto bf16-exact grids so the correctness check is
    # independent of how many MXU passes the backend uses for the f32 matmul
    # (every product and 4-term sum below is exact in f32 either way).
    x = jnp.round(jax.random.normal(k_x, (N, F), dtype=jnp.float32) * 8.0) / 8.0

    # nn.Linear(4, 3) default init: uniform in [-1/sqrt(fan_in), 1/sqrt(fan_in)].
    bound = 1.0 / jnp.sqrt(jnp.float32(F))
    weight = jnp.round(jax.random.uniform(k_w, (C, F), jnp.float32,
                                          -bound, bound) * 64.0) / 64.0
    bias = jnp.round(jax.random.uniform(k_b, (C,), jnp.float32,
                                        -bound, bound) * 64.0) / 64.0

    # One-time parameter-init layout prep (like bias_col before, done ONCE).
    w_big, b_big = prepare_params(weight, bias)

    forward = jax.jit(softmax_classifier_forward)

    # 128-aligned batch: fully zero-copy fast path.
    out = jax.block_until_ready(forward(x, w_big, b_big))
    ref = x @ weight.T + bias
    assert out.shape == (N, C)
    assert jnp.allclose(out, ref, atol=1e-6, rtol=1e-6)

    # Iris-sized batch (150 rows): exercises the tail-pad fallback + ragged block.
    x2 = jnp.round(jax.random.normal(k_x2, (150, F), dtype=jnp.float32) * 8.0) / 8.0
    out2 = jax.block_until_ready(forward(x2, w_big, b_big))
    assert out2.shape == (150, C)
    assert jnp.allclose(out2, x2 @ weight.T + bias, atol=1e-6, rtol=1e-6)

    print("KERNEL_OK")
</pallas_src>

<mosaic_0001>
module attributes {stable_mosaic.version = 11 : i64} {
  func.func @_packed_linear_kernel(%arg0: i32, %arg1: memref<8x512xf32, #tpu.memory_space<vmem>>, %arg2: memref<512x384xf32, #tpu.memory_space<vmem>>, %arg3: memref<1x384xf32, #tpu.memory_space<vmem>>, %arg4: memref<8x384xf32, #tpu.memory_space<vmem>>) attributes {dimension_semantics = [#tpu.dimension_semantics<parallel>], iteration_bounds = array<i64: 1>, scalar_prefetch = 0 : i64, scratch_operands = 0 : i64, tpu.core_type = #tpu.core_type<tc>, window_params = [{transform_indices = @transform_0, window_bounds = array<i64: 8, 512>}, {pipeline_mode = #tpu.pipeline_mode<synchronous>, transform_indices = @transform_1, window_bounds = array<i64: 512, 384>}, {pipeline_mode = #tpu.pipeline_mode<synchronous>, transform_indices = @transform_2, window_bounds = array<i64: 1, 384>}, {transform_indices = @transform_3, window_bounds = array<i64: 8, 384>}]} {
    %c0 = arith.constant 0 : index
    %c0_0 = arith.constant 0 : index
    %0 = vector.load %arg1[%c0, %c0_0] : memref<8x512xf32, #tpu.memory_space<vmem>>, vector<8x512xf32>
    %c0_1 = arith.constant 0 : index
    %c0_2 = arith.constant 0 : index
    %1 = vector.load %arg2[%c0_1, %c0_2] : memref<512x384xf32, #tpu.memory_space<vmem>>, vector<512x384xf32>
    %cst = arith.constant dense<0.000000e+00> : vector<8x384xf32>
    %2 = tpu.matmul %0, %1, %cst {dimension_numbers = #tpu.dot_dimension_numbers<[1], [0], [0], [1], [0, 0, 1, 1], [], []>} : vector<8x512xf32>, vector<512x384xf32>, vector<8x384xf32> -> vector<8x384xf32>
    %c0_3 = arith.constant 0 : index
    %c0_4 = arith.constant 0 : index
    %3 = vector.load %arg3[%c0_3, %c0_4] : memref<1x384xf32, #tpu.memory_space<vmem>>, vector<1x384xf32>
    %4 = vector.broadcast %3 : vector<1x384xf32> to vector<8x384xf32>
    %5 = arith.addf %2, %4 : vector<8x384xf32>
    %c0_5 = arith.constant 0 : index
    %c0_6 = arith.constant 0 : index
    %6 = vector.load %arg4[%c0_5, %c0_6] : memref<8x384xf32, #tpu.memory_space<vmem>>, vector<8x384xf32>
    tpu.vector_store %arg4[%c0_5, %c0_6], %5 {strides = array<i32>} : memref<8x384xf32, #tpu.memory_space<vmem>>, vector<8x384xf32>,
    return
  }
  func.func @transform_0(%arg0: i32) -> (i32, i32) {
    %c0_i32 = arith.constant 0 : i32
    %c0_i32_0 = arith.constant 0 : i32
    return %arg0, %c0_i32 : i32, i32
  }
  func.func @transform_1(%arg0: i32) -> (i32, i32) {
    %c0_i32 = arith.constant 0 : i32
    %c0_i32_0 = arith.constant 0 : i32
    %c0_i32_1 = arith.constant 0 : i32
    return %c0_i32, %c0_i32_0 : i32, i32
  }
  func.func @transform_2(%arg0: i32) -> (i32, i32) {
    %c0_i32 = arith.constant 0 : i32
    %c0_i32_0 = arith.constant 0 : i32
    %c0_i32_1 = arith.constant 0 : i32
    return %c0_i32, %c0_i32_0 : i32, i32
  }
  func.func @transform_3(%arg0: i32) -> (i32, i32) {
    %c0_i32 = arith.constant 0 : i32
    %c0_i32_0 = arith.constant 0 : i32
    return %arg0, %c0_i32 : i32, i32
  }
}

</mosaic_0001>

<bundles_post_ra>
// kernel: softmax_classifier_forward.1
= control target key start
LH: loop header
LB: loop body
LE: loop exit
PB: predicated region body
PF: predicated region fallthrough
CT: control target
= control target key end

     0   :  { %8 = vsyncpa [#allocation3], 0  ;;  %s594_s15 = smov [#allocation2]   ;;  %s595_s17 = smov 384   ;;  %s658_s0 = inlined_call_operand.vmem [shape: f32[2,512], index: 0, kind: input, shape index: {}]   ;;  %s659_s1 = inlined_call_operand.hbm [shape: f32[512,384], index: 1, kind: input, shape index: {}]   ;;  %s660_s2 = inlined_call_operand.vmem [shape: f32[1,384], index: 2, kind: input, shape index: {}]   ;;  %s661_s3 = inlined_call_operand.vmem [shape: f32[2,384], index: 3, kind: output, shape index: {}]  }
   0x1   :  { %s15_s14 = sshll.u32 %s659_s1, 4  ;;  %s17_s16 = sshll.u32 %s594_s15, 4  ;;  %s16_s14 = int_to_ptr.hbm [resolvable:$true] %s15_s14  ;;  %s18_s16 = int_to_ptr.vmem [resolvable:$true] %s17_s16 }
   0x2   :  { %s596_s18 = smov 24  }
   0x3   :  { %23 = dma.hbm_to_vmem [thread:$0]  %s16_s14, 24576, %s18_s16, [#allocation3], %s595_s17, %s595_s17, %s596_s18  }
   0x4   :  { %592 = dma.done.wait [#allocation3], 24576  }
   0x5   :  { %593 = vsyncadd [#allocation3], 4294942720  ;;  %v175_v0 = vld [vmem:[#allocation2 + $0x468] sm:$0xff]  ;;  %v172_v2 = vld [vmem:[#allocation2 + $0x450] sm:$0xff]  ;;  %vm498_vm0 = vcmask 1041408   ;;  %vm500_vm1 = vcmask 1043456  }
   0x6   :  { %v79_v1 = vld [vmem:[#allocation2 + $0x168] sm:$0xff]  ;;  %293 = vmatpush.msra.mxu2 %v175_v0  ;;  %v76_v4 = vld [vmem:[#allocation2 + $0x150] sm:$0xff]  ;;  %v169_v6 = vld [vmem:[#allocation2 + $0x438] sm:$0xff] }
   0x7   :  { %253 = vmatpush.msra.mxu0 %v79_v1  ;;  %v223_v3 = vld [vmem:[#allocation2 + $0x5e8] sm:$0xff]  ;;  %v220_v7 = vld [vmem:[#allocation2 + $0x5d0] sm:$0xff]  ;;  %v73_v8 = vld [vmem:[#allocation2 + $0x138] sm:$0xff] }
   0x8   :  { %v127_v5 = vld [vmem:[#allocation2 + $0x2e8] sm:$0xff]  ;;  %313 = vmatpush.msra.mxu3 %v223_v3  ;;  %294 = vmatpush.msra.mxu2 %v172_v2  ;;  %v124_v9 = vld [vmem:[#allocation2 + $0x2d0] sm:$0xff]  ;;  %v217_v10 = vld [vmem:[#allocation2 + $0x5b8] sm:$0xff] }
   0x9   :  { %273 = vmatpush.msra.mxu1 %v127_v5  ;;  %254 = vmatpush.msra.mxu0 %v76_v4  ;;  %v166_v11 = vld [vmem:[#allocation2 + $0x420] sm:$0xff]  ;;  %v121_v13 = vld [vmem:[#allocation2 + $0x2b8] sm:$0xff]  ;;  %v163_v16 = vld [vmem:[#allocation2 + $0x408] sm:$0xff] }
   0xa   :  { %314 = vmatpush.msra.mxu3 %v220_v7  ;;  %v70_v12 = vld [vmem:[#allocation2 + $0x120] sm:$0xff]  ;;  %295 = vmatpush.msra.mxu2 %v169_v6  ;;  %v67_v17 = vld [vmem:[#allocation2 + $0x108] sm:$0xff]  ;;  %v160_v20 = vld [vmem:[#allocation2 + $0x3f0] sm:$0xff] }
   0xb   :  { %274 = vmatpush.msra.mxu1 %v124_v9  ;;  %255 = vmatpush.msra.mxu0 %v73_v8  ;;  %v214_v14 = vld [vmem:[#allocation2 + $0x5a0] sm:$0xff]  ;;  %v211_v18 = vld [vmem:[#allocation2 + $0x588] sm:$0xff]  ;;  %v64_v21 = vld [vmem:[#allocation2 + $0xf0] sm:$0xff] }
   0xc   :  { %v118_v15 = vld [vmem:[#allocation2 + $0x2a0] sm:$0xff]  ;;  %315 = vmatpush.msra.mxu3 %v217_v10  ;;  %296 = vmatpush.msra.mxu2 %v166_v11  ;;  %v115_v19 = vld [vmem:[#allocation2 + $0x288] sm:$0xff]  ;;  %v208_v22 = vld [vmem:[#allocation2 + $0x570] sm:$0xff] }
   0xd   :  { %275 = vmatpush.msra.mxu1 %v121_v13  ;;  %256 = vmatpush.msra.mxu0 %v70_v12  ;;  %v112_v23 = vld [vmem:[#allocation2 + $0x270] sm:$0xff]  ;;  %v157_v24 = vld [vmem:[#allocation2 + $0x3d8] sm:$0xff]  ;;  %v154_v28 = vld [vmem:[#allocation2 + $0x3c0] sm:$0xff] }
   0xe   :  { %316 = vmatpush.msra.mxu3 %v214_v14  ;;  %297 = vmatpush.msra.mxu2 %v163_v16  ;;  %v61_v25 = vld [vmem:[#allocation2 + $0xd8] sm:$0xff]  ;;  %v58_v29 = vld [vmem:[#allocation2 + $0xc0] sm:$0xff]  ;;  %v151_v32 = vld [vmem:[#allocation2 + $0x3a8] sm:$0xff] }
   0xf   :  { %276 = vmatpush.msra.mxu1 %v118_v15  ;;  %257 = vmatpush.msra.mxu0 %v67_v17  ;;  %v205_v26 = vld [vmem:[#allocation2 + $0x558] sm:$0xff]  ;;  %v202_v30 = vld [vmem:[#allocation2 + $0x540] sm:$0xff]  ;;  %v55_v33 = vld [vmem:[#allocation2 + $0xa8] sm:$0xff] }
  0x10   :  { %317 = vmatpush.msra.mxu3 %v211_v18  ;;  %298 = vmatpush.msra.mxu2 %v160_v20  ;;  %v109_v27 = vld [vmem:[#allocation2 + $0x258] sm:$0xff]  ;;  %v106_v31 = vld [vmem:[#allocation2 + $0x240] sm:$0xff]  ;;  %v199_v34 = vld [vmem:[#allocation2 + $0x528] sm:$0xff] }
  0x11   :  { %277 = vmatpush.msra.mxu1 %v115_v19  ;;  %258 = vmatpush.msra.mxu0 %v64_v21  ;;  %v103_v35 = vld [vmem:[#allocation2 + $0x228] sm:$0xff]  ;;  %v148_v36 = vld [vmem:[#allocation2 + $0x390] sm:$0xff]  ;;  %v145_v40 = vld [vmem:[#allocation2 + $0x378] sm:$0xff] }
  0x12   :  { %318 = vmatpush.msra.mxu3 %v208_v22  ;;  %299 = vmatpush.msra.mxu2 %v157_v24  ;;  %v52_v37 = vld [vmem:[#allocation2 + $0x90] sm:$0xff]  ;;  %v49_v41 = vld [vmem:[#allocation2 + $0x78] sm:$0xff]  ;;  %v142_v44 = vld [vmem:[#allocation2 + $0x360] sm:$0xff] }
  0x13   :  { %278 = vmatpush.msra.mxu1 %v112_v23  ;;  %259 = vmatpush.msra.mxu0 %v61_v25  ;;  %v196_v38 = vld [vmem:[#allocation2 + $0x510] sm:$0xff]  ;;  %v193_v42 = vld [vmem:[#allocation2 + $0x4f8] sm:$0xff]  ;;  %v46_v45 = vld [vmem:[#allocation2 + $0x60] sm:$0xff] }
  0x14   :  { %319 = vmatpush.msra.mxu3 %v205_v26  ;;  %300 = vmatpush.msra.mxu2 %v154_v28  ;;  %v100_v39 = vld [vmem:[#allocation2 + $0x210] sm:$0xff]  ;;  %v97_v43 = vld [vmem:[#allocation2 + $0x1f8] sm:$0xff]  ;;  %v190_v46 = vld [vmem:[#allocation2 + $0x4e0] sm:$0xff] }
  0x15   :  { %279 = vmatpush.msra.mxu1 %v109_v27  ;;  %260 = vmatpush.msra.mxu0 %v58_v29  ;;  %v94_v47 = vld [vmem:[#allocation2 + $0x1e0] sm:$0xff]  ;;  %v139_v48 = vld [vmem:[#allocation2 + $0x348] sm:$0xff]  ;;  %v136_v52 = vld [vmem:[#allocation2 + $0x330] sm:$0xff] }
  0x16   :  { %320 = vmatpush.msra.mxu3 %v202_v30  ;;  %301 = vmatpush.msra.mxu2 %v151_v32  ;;  %v43_v49 = vld [vmem:[#allocation2 + $0x48] sm:$0xff]  ;;  %v40_v53 = vld [vmem:[#allocation2 + $0x30] sm:$0xff]  ;;  %v133_v56 = vld [vmem:[#allocation2 + $0x318] sm:$0xff] }
  0x17   :  { %280 = vmatpush.msra.mxu1 %v106_v31  ;;  %261 = vmatpush.msra.mxu0 %v55_v33  ;;  %v187_v50 = vld [vmem:[#allocation2 + $0x4c8] sm:$0xff]  ;;  %v184_v54 = vld [vmem:[#allocation2 + $0x4b0] sm:$0xff]  ;;  %v37_v57 = vld [vmem:[#allocation2 + $0x18] sm:$0xff] }
  0x18   :  { %321 = vmatpush.msra.mxu3 %v199_v34  ;;  %302 = vmatpush.msra.mxu2 %v148_v36  ;;  %v91_v51 = vld [vmem:[#allocation2 + $0x1c8] sm:$0xff]  ;;  %v88_v55 = vld [vmem:[#allocation2 + $0x1b0] sm:$0xff]  ;;  %v181_v58 = vld [vmem:[#allocation2 + $0x498] sm:$0xff] }
  0x19   :  { %281 = vmatpush.msra.mxu1 %v103_v35  ;;  %262 = vmatpush.msra.mxu0 %v52_v37  ;;  %v85_v59 = vld [vmem:[#allocation2 + $0x198] sm:$0xff]  ;;  %v130_v60 = vld [vmem:[#allocation2 + $0x300] sm:$0xff]  ;;  %v176_v62 = vld [vmem:[#allocation2 + $0x470] sm:$0xff] }
  0x1a   :  { %322 = vmatpush.msra.mxu3 %v196_v38  ;;  %303 = vmatpush.msra.mxu2 %v145_v40  ;;  %v34_v61 = vld [vmem:[#allocation2] sm:$0xff]  ;;  %v80_v0 = vld [vmem:[#allocation2 + $0x170] sm:$0xff]  ;;  %v173_v2 = vld [vmem:[#allocation2 + $0x458] sm:$0xff] }
  0x1b   :  { %282 = vmatpush.msra.mxu1 %v100_v39  ;;  %263 = vmatpush.msra.mxu0 %v49_v41  ;;  %v178_v63 = vld [vmem:[#allocation2 + $0x480] sm:$0xff]  ;;  %v224_v1 = vld [vmem:[#allocation2 + $0x5f0] sm:$0xff]  ;;  %v77_v4 = vld [vmem:[#allocation2 + $0x158] sm:$0xff] }
  0x1c   :  { %323 = vmatpush.msra.mxu3 %v193_v42  ;;  %304 = vmatpush.msra.mxu2 %v142_v44  ;;  %v82_v3 = vld [vmem:[#allocation2 + $0x180] sm:$0xff]  ;;  %v128_v5 = vld [vmem:[#allocation2 + $0x2f0] sm:$0xff]  ;;  %v221_v7 = vld [vmem:[#allocation2 + $0x5d8] sm:$0xff] }
  0x1d   :  { %283 = vmatpush.msra.mxu1 %v97_v43  ;;  %264 = vmatpush.msra.mxu0 %v46_v45  ;;  %v170_v6 = vld [vmem:[#allocation2 + $0x440] sm:$0xff]  ;;  %v125_v9 = vld [vmem:[#allocation2 + $0x2d8] sm:$0xff]  ;;  %v167_v10 = vld [vmem:[#allocation2 + $0x428] sm:$0xff] }
  0x1e   :  { %324 = vmatpush.msra.mxu3 %v190_v46  ;;  %305 = vmatpush.msra.mxu2 %v139_v48  ;;  %v74_v8 = vld [vmem:[#allocation2 + $0x140] sm:$0xff]  ;;  %v71_v12 = vld [vmem:[#allocation2 + $0x128] sm:$0xff]  ;;  %v30_v14 = vld [vmem:[%s658_s0] sm:$0xff] }
  0x1f   :  { %284 = vmatpush.msra.mxu1 %v94_v47  ;;  %265 = vmatpush.msra.mxu0 %v43_v49  ;;  %v218_v11 = vld [vmem:[#allocation2 + $0x5c0] sm:$0xff]  ;;  %v32_v16 = vld [vmem:[%s658_s0 + $0x10] sm:$0xff]  ;;  %v164_v17 = vld [vmem:[#allocation2 + $0x410] sm:$0xff]  ;;  %238 = vst [vmem:[#allocation1] ss:$4 sm:$0xff] %v30_v14 }
  0x20   :  { %325 = vmatpush.msra.mxu3 %v187_v50  ;;  %306 = vmatpush.msra.mxu2 %v136_v52  ;;  %v122_v13 = vld [vmem:[#allocation2 + $0x2c0] sm:$0xff]  ;;  %v215_v18 = vld [vmem:[#allocation2 + $0x5a8] sm:$0xff]  ;;  %v33_v19 = vld [vmem:[%s658_s0 + $0x18] sm:$0xff]  ;;  %242 = vst [vmem:[#allocation1 + $0x2] ss:$4 sm:$0xff] %v32_v16 }
  0x21   :  { %285 = vmatpush.msra.mxu1 %v91_v51  ;;  %266 = vmatpush.msra.mxu0 %v40_v53  ;;  %v31_v15 = vld [vmem:[%s658_s0 + $0x8] sm:$0xff]  ;;  %v68_v20 = vld [vmem:[#allocation2 + $0x110] sm:$0xff]  ;;  %v119_v21 = vld [vmem:[#allocation2 + $0x2a8] sm:$0xff]  ;;  %244 = vst [vmem:[#allocation1 + $0x3] ss:$4 sm:$0xff] %v33_v19 }
  0x22   :  { %326 = vmatpush.msra.mxu3 %v184_v54  ;;  %307 = vmatpush.msra.mxu2 %v133_v56  ;;  %240 = vst [vmem:[#allocation1 + $0x1] ss:$4 sm:$0xff] %v31_v15  ;;  %v161_v22 = vld [vmem:[#allocation2 + $0x3f8] sm:$0xff]  ;;  %v212_v23 = vld [vmem:[#allocation2 + $0x590] sm:$0xff]  ;;  %v158_v26 = vld [vmem:[#allocation2 + $0x3e0] sm:$0xff] }
  0x23   :  { %286 = vmatpush.msra.mxu1 %v88_v55  ;;  %267 = vmatpush.msra.mxu0 %v37_v57  ;;  %v65_v24 = vld [vmem:[#allocation2 + $0xf8] sm:$0xff]  ;;  %v116_v25 = vld [vmem:[#allocation2 + $0x290] sm:$0xff]  ;;  %v62_v28 = vld [vmem:[#allocation2 + $0xe0] sm:$0xff] }
  0x24   :  { %327 = vmatpush.msra.mxu3 %v181_v58  ;;  %308 = vmatpush.msra.mxu2 %v130_v60  ;;  %v209_v27 = vld [vmem:[#allocation2 + $0x578] sm:$0xff]  ;;  %v155_v30 = vld [vmem:[#allocation2 + $0x3c8] sm:$0xff]  ;;  %v206_v31 = vld [vmem:[#allocation2 + $0x560] sm:$0xff] }
  0x25   :  { %287 = vmatpush.msra.mxu1 %v85_v59  ;;  %268 = vmatpush.msra.mxu0 %v34_v61  ;;  %v113_v29 = vld [vmem:[#allocation2 + $0x278] sm:$0xff]  ;;  %v59_v32 = vld [vmem:[#allocation2 + $0xc8] sm:$0xff]  ;;  %v110_v33 = vld [vmem:[#allocation2 + $0x260] sm:$0xff] }
  0x26   :  { %373 = vmatpush.msrb.mxu2 %v176_v62  ;;  %328 = vmatpush.msra.mxu3 %v178_v63  ;;  %v152_v34 = vld [vmem:[#allocation2 + $0x3b0] sm:$0xff]  ;;  %v203_v35 = vld [vmem:[#allocation2 + $0x548] sm:$0xff]  ;;  %v149_v38 = vld [vmem:[#allocation2 + $0x398] sm:$0xff] }
  0x27   :  { %333 = vmatpush.msrb.mxu0 %v80_v0  ;;  %288 = vmatpush.msra.mxu1 %v82_v3  ;;  %v56_v36 = vld [vmem:[#allocation2 + $0xb0] sm:$0xff]  ;;  %v107_v37 = vld [vmem:[#allocation2 + $0x248] sm:$0xff]  ;;  %v53_v40 = vld [vmem:[#allocation2 + $0x98] sm:$0xff] }
  0x28   :  { %393 = vmatpush.msrb.mxu3 %v224_v1  ;;  %374 = vmatpush.msrb.mxu2 %v173_v2  ;;  %v200_v39 = vld [vmem:[#allocation2 + $0x530] sm:$0xff]  ;;  %v146_v42 = vld [vmem:[#allocation2 + $0x380] sm:$0xff]  ;;  %v197_v43 = vld [vmem:[#allocation2 + $0x518] sm:$0xff] }
  0x29   :  { %334 = vmatpush.msrb.mxu0 %v77_v4  ;;  %353 = vmatpush.msrb.mxu1 %v128_v5  ;;  %v104_v41 = vld [vmem:[#allocation2 + $0x230] sm:$0xff]  ;;  %v50_v44 = vld [vmem:[#allocation2 + $0x80] sm:$0xff]  ;;  %v101_v45 = vld [vmem:[#allocation2 + $0x218] sm:$0xff] }
  0x2a   :  { %375 = vmatpush.msrb.mxu2 %v170_v6  ;;  %394 = vmatpush.msrb.mxu3 %v221_v7  ;;  %v143_v46 = vld [vmem:[#allocation2 + $0x368] sm:$0xff]  ;;  %v194_v47 = vld [vmem:[#allocation2 + $0x500] sm:$0xff]  ;;  %v140_v51 = vld [vmem:[#allocation2 + $0x350] sm:$0xff] }
  0x2b   :  { %335 = vmatpush.msrb.mxu0 %v74_v8  ;;  %354 = vmatpush.msrb.mxu1 %v125_v9  ;;  %v632_v48 = vld.sshfl [vmem:[#allocation1 + $0x10] sm:$0xff pattern:$0x73625140]  ;;  %v98_v50 = vld [vmem:[#allocation2 + $0x200] sm:$0xff]  ;;  %v44_v55 = vld [vmem:[#allocation2 + $0x50] sm:$0xff] }
  0x2c   :  { %376 = vmatpush.msrb.mxu2 %v167_v10  ;;  %395 = vmatpush.msrb.mxu3 %v218_v11  ;;  %v47_v49 = vld [vmem:[#allocation2 + $0x68] sm:$0xff]  ;;  %v634_v53 = vld.sshfl [vmem:[#allocation1] sm:$0xff pattern:$0x73625140]  ;;  %v188_v58 = vld [vmem:[#allocation2 + $0x4d0] sm:$0xff] }
  0x2d   :  { %336 = vmatpush.msrb.mxu0 %v71_v12  ;;  %355 = vmatpush.msrb.mxu1 %v122_v13  ;;  %v191_v52 = vld [vmem:[#allocation2 + $0x4e8] sm:$0xff]  ;;  %v637_v54 = vld.sshfl [vmem:[#allocation1 + $0x18] sm:$0xff pattern:$0x73625140]  ;;  %v137_v57 = vld [vmem:[#allocation2 + $0x338] sm:$0xff] }
  0x2e   :  { %377 = vmatpush.msrb.mxu2 %v164_v17  ;;  %396 = vmatpush.msrb.mxu3 %v215_v18  ;;  %v95_v56 = vld [vmem:[#allocation2 + $0x1e8] sm:$0xff]  ;;  %v640_v59 = vld.sshfl [vmem:[#allocation1 + $0x8] sm:$0xff pattern:$0x73625140]  ;;  %v41_v60 = vld [vmem:[#allocation2 + $0x38] sm:$0xff] }
  0x2f   :  { %337 = vmatpush.msrb.mxu0 %v68_v20  ;;  %356 = vmatpush.msrb.mxu1 %v119_v21  ;;  %v92_v61 = vld [vmem:[#allocation2 + $0x1d0] sm:$0xff]  ;;  %v134_v62 = vld [vmem:[#allocation2 + $0x320] sm:$0xff]  ;;  %v185_v63 = vld [vmem:[#allocation2 + $0x4b8] sm:$0xff] }
  0x30   :  { %378 = vmatpush.msrb.mxu2 %v161_v22  ;;  %397 = vmatpush.msrb.mxu3 %v212_v23  ;;  %v38_v0 = vld [vmem:[#allocation2 + $0x20] sm:$0xff]  ;;  %v89_v1 = vld [vmem:[#allocation2 + $0x1b8] sm:$0xff]  ;;  %v131_v2 = vld [vmem:[#allocation2 + $0x308] sm:$0xff] }
  0x31   :  { %338 = vmatpush.msrb.mxu0 %v65_v24  ;;  %357 = vmatpush.msrb.mxu1 %v116_v25  ;;  %v182_v3 = vld [vmem:[#allocation2 + $0x4a0] sm:$0xff]  ;;  %v35_v4 = vld [vmem:[#allocation2 + $0x8] sm:$0xff]  ;;  %v177_v5 = vld [vmem:[#allocation2 + $0x478] sm:$0xff] }
  0x32   :  { %379 = vmatpush.msrb.mxu2 %v158_v26  ;;  %398 = vmatpush.msrb.mxu3 %v209_v27  ;;  %v86_v6 = vld [vmem:[#allocation2 + $0x1a0] sm:$0xff]  ;;  %v179_v7 = vld [vmem:[#allocation2 + $0x488] sm:$0xff]  ;;  %v81_v8 = vld [vmem:[#allocation2 + $0x178] sm:$0xff] }
  0x33   :  { %339 = vmatpush.msrb.mxu0 %v62_v28  ;;  %358 = vmatpush.msrb.mxu1 %v113_v29  ;;  %v174_v9 = vld [vmem:[#allocation2 + $0x460] sm:$0xff]  ;;  %v225_v10 = vld [vmem:[#allocation2 + $0x5f8] sm:$0xff]  ;;  %v83_v11 = vld [vmem:[#allocation2 + $0x188] sm:$0xff] }
  0x34   :  { %380 = vmatpush.msrb.mxu2 %v155_v30  ;;  %399 = vmatpush.msrb.mxu3 %v206_v31  ;;  %v78_v12 = vld [vmem:[#allocation2 + $0x160] sm:$0xff]  ;;  %v171_v13 = vld [vmem:[#allocation2 + $0x448] sm:$0xff]  ;;  %v129_v14 = vld [vmem:[#allocation2 + $0x2f8] sm:$0xff] }
  0x35   :  { %340 = vmatpush.msrb.mxu0 %v59_v32  ;;  %359 = vmatpush.msrb.mxu1 %v110_v33  ;;  %v222_v15 = vld [vmem:[#allocation2 + $0x5e0] sm:$0xff]  ;;  %v75_v16 = vld [vmem:[#allocation2 + $0x148] sm:$0xff]  ;;  %v168_v17 = vld [vmem:[#allocation2 + $0x430] sm:$0xff] }
  0x36   :  { %381 = vmatpush.msrb.mxu2 %v152_v34  ;;  %400 = vmatpush.msrb.mxu3 %v203_v35  ;;  %v126_v18 = vld [vmem:[#allocation2 + $0x2e0] sm:$0xff]  ;;  %v219_v19 = vld [vmem:[#allocation2 + $0x5c8] sm:$0xff]  ;;  %v72_v20 = vld [vmem:[#allocation2 + $0x130] sm:$0xff] }
  0x37   :  { %341 = vmatpush.msrb.mxu0 %v56_v36  ;;  %360 = vmatpush.msrb.mxu1 %v107_v37  ;;  %v165_v21 = vld [vmem:[#allocation2 + $0x418] sm:$0xff]  ;;  %v123_v22 = vld [vmem:[#allocation2 + $0x2c8] sm:$0xff]  ;;  %v216_v23 = vld [vmem:[#allocation2 + $0x5b0] sm:$0xff] }
  0x38   :  { %382 = vmatpush.msrb.mxu2 %v149_v38  ;;  %401 = vmatpush.msrb.mxu3 %v200_v39  ;;  %v69_v24 = vld [vmem:[#allocation2 + $0x118] sm:$0xff]  ;;  %v162_v25 = vld [vmem:[#allocation2 + $0x400] sm:$0xff]  ;;  %v120_v26 = vld [vmem:[#allocation2 + $0x2b0] sm:$0xff] }
  0x39   :  { %342 = vmatpush.msrb.mxu0 %v53_v40  ;;  %361 = vmatpush.msrb.mxu1 %v104_v41  ;;  %v213_v27 = vld [vmem:[#allocation2 + $0x598] sm:$0xff]  ;;  %v66_v28 = vld [vmem:[#allocation2 + $0x100] sm:$0xff]  ;;  %v159_v29 = vld [vmem:[#allocation2 + $0x3e8] sm:$0xff] }
  0x3a   :  { %383 = vmatpush.msrb.mxu2 %v146_v42  ;;  %402 = vmatpush.msrb.mxu3 %v197_v43  ;;  %v117_v30 = vld [vmem:[#allocation2 + $0x298] sm:$0xff]  ;;  %v210_v31 = vld [vmem:[#allocation2 + $0x580] sm:$0xff]  ;;  %v63_v32 = vld [vmem:[#allocation2 + $0xe8] sm:$0xff] }
  0x3b   :  { %343 = vmatpush.msrb.mxu0 %v50_v44  ;;  %362 = vmatpush.msrb.mxu1 %v101_v45  ;;  %v156_v33 = vld [vmem:[#allocation2 + $0x3d0] sm:$0xff]  ;;  %v114_v34 = vld [vmem:[#allocation2 + $0x280] sm:$0xff]  ;;  %v207_v35 = vld [vmem:[#allocation2 + $0x568] sm:$0xff] }
  0x3c   :  { %384 = vmatpush.msrb.mxu2 %v143_v46  ;;  %403 = vmatpush.msrb.mxu3 %v194_v47  ;;  %v60_v36 = vld [vmem:[#allocation2 + $0xd0] sm:$0xff]  ;;  %v153_v37 = vld [vmem:[#allocation2 + $0x3b8] sm:$0xff]  ;;  %v111_v38 = vld [vmem:[#allocation2 + $0x268] sm:$0xff] }
  0x3d   :  { %309 = vmatmul.f32.vlgmr.msra.gmra.mxu2 %v632_v48  ;;  %344 = vmatpush.msrb.mxu0 %v47_v49  ;;  %v204_v39 = vld [vmem:[#allocation2 + $0x550] sm:$0xff]  ;;  %v57_v40 = vld [vmem:[#allocation2 + $0xb8] sm:$0xff]  ;;  %v150_v41 = vld [vmem:[#allocation2 + $0x3a0] sm:$0xff] }
  0x3e   :  { %363 = vmatpush.msrb.mxu1 %v98_v50  ;;  %385 = vmatpush.msrb.mxu2 %v140_v51  ;;  %v108_v42 = vld [vmem:[#allocation2 + $0x250] sm:$0xff]  ;;  %v201_v43 = vld [vmem:[#allocation2 + $0x538] sm:$0xff]  ;;  %v54_v44 = vld [vmem:[#allocation2 + $0xa0] sm:$0xff] }
  0x3f   :  { %404 = vmatpush.msrb.mxu3 %v191_v52  ;;  %269 = vmatmul.f32.vlgmr.msra.gmra.mxu0 %v634_v53  ;;  %v147_v45 = vld [vmem:[#allocation2 + $0x388] sm:$0xff]  ;;  %v105_v46 = vld [vmem:[#allocation2 + $0x238] sm:$0xff]  ;;  %v198_v47 = vld [vmem:[#allocation2 + $0x520] sm:$0xff] }
  0x40   :  { %329 = vmatmul.f32.vlgmr.msra.gmra.mxu3 %v637_v54  ;;  %345 = vmatpush.msrb.mxu0 %v44_v55  ;;  %v51_v49 = vld [vmem:[#allocation2 + $0x88] sm:$0xff]  ;;  %v144_v50 = vld [vmem:[#allocation2 + $0x370] sm:$0xff]  ;;  %v102_v51 = vld [vmem:[#allocation2 + $0x220] sm:$0xff] }
  0x41   :  { %364 = vmatpush.msrb.mxu1 %v95_v56  ;;  %386 = vmatpush.msrb.mxu2 %v137_v57  ;;  %v195_v52 = vld [vmem:[#allocation2 + $0x508] sm:$0xff]  ;;  %v48_v55 = vld [vmem:[#allocation2 + $0x70] sm:$0xff]  ;;  %v141_v56 = vld [vmem:[#allocation2 + $0x358] sm:$0xff] }
  0x42   :  { %405 = vmatpush.msrb.mxu3 %v188_v58  ;;  %289 = vmatmul.f32.vlgmr.msra.gmra.mxu1 %v640_v59  ;;  %v99_v57 = vld [vmem:[#allocation2 + $0x208] sm:$0xff]  ;;  %v192_v58 = vld [vmem:[#allocation2 + $0x4f0] sm:$0xff] }
  0x43   :  { %346 = vmatpush.msrb.mxu0 %v41_v60  ;;  %365 = vmatpush.msrb.mxu1 %v92_v61  ;;  %v45_v60 = vld [vmem:[#allocation2 + $0x58] sm:$0xff]  ;;  %v138_v61 = vld [vmem:[#allocation2 + $0x340] sm:$0xff] }
  0x44   :  { %387 = vmatpush.msrb.mxu2 %v134_v62  ;;  %406 = vmatpush.msrb.mxu3 %v185_v63  ;;  %v96_v62 = vld [vmem:[#allocation2 + $0x1f0] sm:$0xff]  ;;  %v189_v63 = vld [vmem:[#allocation2 + $0x4d8] sm:$0xff] }
  0x45   :  { %347 = vmatpush.msrb.mxu0 %v38_v0  ;;  %366 = vmatpush.msrb.mxu1 %v89_v1  ;;  %v42_v0 = vld [vmem:[#allocation2 + $0x40] sm:$0xff]  ;;  %v135_v1 = vld [vmem:[#allocation2 + $0x328] sm:$0xff] }
  0x46   :  { %388 = vmatpush.msrb.mxu2 %v131_v2  ;;  %407 = vmatpush.msrb.mxu3 %v182_v3  ;;  %v93_v2 = vld [vmem:[#allocation2 + $0x1d8] sm:$0xff]  ;;  %v186_v3 = vld [vmem:[#allocation2 + $0x4c0] sm:$0xff] }
  0x47   :  { %389 = vmatmul.f32.vlgmr.msrb.gmra.mxu2 %v632_v48  ;;  %348 = vmatpush.msrb.mxu0 %v35_v4  ;;  %v39_v4 = vld [vmem:[#allocation2 + $0x28] sm:$0xff] }
  0x48   :  { %453 = vmatpush.msra.mxu2 %v177_v5  ;;  %367 = vmatpush.msrb.mxu1 %v86_v6  ;;  %v132_v5 = vld [vmem:[#allocation2 + $0x310] sm:$0xff]  ;;  %v90_v6 = vld [vmem:[#allocation2 + $0x1c0] sm:$0xff] }
  0x49   :  { %408 = vmatpush.msrb.mxu3 %v179_v7  ;;  %349 = vmatmul.f32.vlgmr.msrb.gmra.mxu0 %v634_v53  ;;  %v183_v7 = vld [vmem:[#allocation2 + $0x4a8] sm:$0xff] }
  0x4a   :  { %409 = vmatmul.f32.vlgmr.msrb.gmra.mxu3 %v637_v54  ;;  %413 = vmatpush.msra.mxu0 %v81_v8  ;;  %v36_v8 = vld [vmem:[#allocation2 + $0x10] sm:$0xff] }
  0x4b   :  { %454 = vmatpush.msra.mxu2 %v174_v9  ;;  %473 = vmatpush.msra.mxu3 %v225_v10  ;;  %v87_v9 = vld [vmem:[#allocation2 + $0x1a8] sm:$0xff]  ;;  %v180_v10 = vld [vmem:[#allocation2 + $0x490] sm:$0xff] }
  0x4c   :  { %368 = vmatpush.msrb.mxu1 %v83_v11  ;;  %414 = vmatpush.msra.mxu0 %v78_v12  ;;  %v84_v11 = vld [vmem:[#allocation2 + $0x190] sm:$0xff] }
  0x4d   :  { %369 = vmatmul.f32.vlgmr.msrb.gmra.mxu1 %v640_v59  ;;  %455 = vmatpush.msra.mxu2 %v171_v13 }
  0x4e   :  { %433 = vmatpush.msra.mxu1 %v129_v14  ;;  %474 = vmatpush.msra.mxu3 %v222_v15  ;;  %v226_v14 = vld [vmem:[%s660_s2] sm:$0x7] }
  0x4f   :  { %415 = vmatpush.msra.mxu0 %v75_v16  ;;  %456 = vmatpush.msra.mxu2 %v168_v17  ;;  %v229_v16 = vperm.slane %v226_v14, 1 }
  0x50   :  { %434 = vmatpush.msra.mxu1 %v126_v18  ;;  %475 = vmatpush.msra.mxu3 %v219_v19 }
  0x51   :  { %416 = vmatpush.msra.mxu0 %v72_v20  ;;  %457 = vmatpush.msra.mxu2 %v165_v21  ;;  %v228_v20 = vperm.slane %v226_v14, 0 }
  0x52   :  { %435 = vmatpush.msra.mxu1 %v123_v22  ;;  %476 = vmatpush.msra.mxu3 %v216_v23 }
  0x53   :  { %417 = vmatpush.msra.mxu0 %v69_v24  ;;  %458 = vmatpush.msra.mxu2 %v162_v25 }
  0x54   :  { %436 = vmatpush.msra.mxu1 %v120_v26  ;;  %477 = vmatpush.msra.mxu3 %v213_v27 }
  0x55   :  { %418 = vmatpush.msra.mxu0 %v66_v28  ;;  %459 = vmatpush.msra.mxu2 %v159_v29 }
  0x56   :  { %437 = vmatpush.msra.mxu1 %v117_v30  ;;  %478 = vmatpush.msra.mxu3 %v210_v31 }
  0x57   :  { %419 = vmatpush.msra.mxu0 %v63_v32  ;;  %460 = vmatpush.msra.mxu2 %v156_v33 }
  0x58   :  { %438 = vmatpush.msra.mxu1 %v114_v34  ;;  %479 = vmatpush.msra.mxu3 %v207_v35 }
  0x59   :  { %420 = vmatpush.msra.mxu0 %v60_v36  ;;  %461 = vmatpush.msra.mxu2 %v153_v37 }
  0x5a   :  { %439 = vmatpush.msra.mxu1 %v111_v38  ;;  %480 = vmatpush.msra.mxu3 %v204_v39 }
  0x5b   :  { %421 = vmatpush.msra.mxu0 %v57_v40  ;;  %462 = vmatpush.msra.mxu2 %v150_v41 }
  0x5c   :  { %440 = vmatpush.msra.mxu1 %v108_v42  ;;  %481 = vmatpush.msra.mxu3 %v201_v43 }
  0x5d   :  { %422 = vmatpush.msra.mxu0 %v54_v44  ;;  %463 = vmatpush.msra.mxu2 %v147_v45 }
  0x5e   :  { %441 = vmatpush.msra.mxu1 %v105_v46  ;;  %482 = vmatpush.msra.mxu3 %v198_v47 }
  0x5f   :  { %423 = vmatpush.msra.mxu0 %v51_v49  ;;  %464 = vmatpush.msra.mxu2 %v144_v50 }
  0x60   :  { %442 = vmatpush.msra.mxu1 %v102_v51  ;;  %483 = vmatpush.msra.mxu3 %v195_v52 }
  0x61   :  { %424 = vmatpush.msra.mxu0 %v48_v55  ;;  %465 = vmatpush.msra.mxu2 %v141_v56 }
  0x62   :  { %443 = vmatpush.msra.mxu1 %v99_v57  ;;  %484 = vmatpush.msra.mxu3 %v192_v58 }
  0x63   :  { %425 = vmatpush.msra.mxu0 %v45_v60  ;;  %466 = vmatpush.msra.mxu2 %v138_v61 }
  0x64   :  { %444 = vmatpush.msra.mxu1 %v96_v62  ;;  %485 = vmatpush.msra.mxu3 %v189_v63 }
  0x65   :  { %426 = vmatpush.msra.mxu0 %v42_v0  ;;  %467 = vmatpush.msra.mxu2 %v135_v1 }
  0x66   :  { %445 = vmatpush.msra.mxu1 %v93_v2  ;;  %486 = vmatpush.msra.mxu3 %v186_v3 }
  0x67   :  { %427 = vmatpush.msra.mxu0 %v39_v4  ;;  %468 = vmatpush.msra.mxu2 %v132_v5 }
  0x68   :  { %446 = vmatpush.msra.mxu1 %v90_v6  ;;  %487 = vmatpush.msra.mxu3 %v183_v7 }
  0x69   :  { %469 = vmatmul.f32.vlgmr.msra.gmra.mxu2 %v632_v48  ;;  %428 = vmatpush.msra.mxu0 %v36_v8 }
  0x6a   :  { %447 = vmatpush.msra.mxu1 %v87_v9  ;;  %488 = vmatpush.msra.mxu3 %v180_v10 }
  0x6b   :  { %429 = vmatmul.f32.vlgmr.msra.gmra.mxu0 %v634_v53  ;;  %489 = vmatmul.f32.vlgmr.msra.gmra.mxu3 %v637_v54  ;;  %v230_v54 = vperm.slane %v226_v14, 2 }
  0x6c   :  { %448 = vmatpush.msra.mxu1 %v84_v11 }
  0x6d   :  { %449 = vmatmul.f32.vlgmr.msra.gmra.mxu1 %v640_v59 }
  0xbc   :  { %v270_v12 = vpop.f32.mrf.mxu0 }
  0xbd   :  { %v271_v22 = vadd.f32 %v270_v12, %v228_v20 }
  0xbf   :  { %v290_v13 = vpop.f32.mrf.mxu1 }
  0xc0   :  { %v310_v15 = vpop.f32.mrf.mxu2  ;;  %v291_v59 = vadd.f32 %v290_v13, %v271_v22 }
  0xc2   :  { %v311_v30 = vadd.f32 %v310_v15, %v291_v59 }
  0xc3   :  { %v330_v17 = vpop.f32.mrf.mxu3 }
  0xc4   :  { %v331_v36 = vadd.f32 %v330_v17, %v311_v30 }
  0xc6   :  { %v350_v48 = vpop.f32.mrf.mxu0 }
  0xc7   :  { %v351_v18 = vadd.f32 %v350_v48, %v229_v16 }
  0xca   :  { %v370_v19 = vpop.f32.mrf.mxu1  ;;  %v390_v53 = vpop.f32.mrf.mxu2 }
  0xcb   :  { %v371_v21 = vadd.f32 %v370_v19, %v351_v18 }
  0xcd   :  { %v391_v23 = vadd.f32 %v390_v53, %v371_v21  ;;  %v410_v24 = vpop.f32.mrf.mxu3 }
  0xcf   :  { %v411_v27 = vadd.f32 %v410_v24, %v391_v23 }
  0xd1   :  { %v496_v33 = vrot.slane %v411_v27, 6 }
  0xd3   :  { %v499_v38 = vsel %vm498_vm0, %v331_v36, %v496_v33 }
  0xe8   :  { %v430_v25 = vpop.f32.mrf.mxu0 }
  0xe9   :  { %v431_v26 = vadd.f32 %v430_v25, %v230_v54 }
  0xea   :  { %v450_v28 = vpop.f32.mrf.mxu1 }
  0xeb   :  { %v451_v29 = vadd.f32 %v450_v28, %v431_v26 }
  0xec   :  { %v470_v31 = vpop.f32.mrf.mxu2 }
  0xed   :  { %v471_v32 = vadd.f32 %v470_v31, %v451_v29 }
  0xee   :  { %v490_v34 = vpop.f32.mrf.mxu3 }
  0xef   :  { %v491_v35 = vadd.f32 %v490_v34, %v471_v32 }
  0xf1   :  { %v497_v37 = vrot.slane %v491_v35, 4 }
  0xf3   :  { %v501_v39 = vsel %vm500_vm1, %v499_v38, %v497_v37 }
  0xf4   :  { %519 = vst [vmem:[#allocation4] sm:$0x3f] %v501_v39 }
  0xfb   :  { %v541_v40 = vld [vmem:[#allocation4] sm:$0x3f] }
  0xfc   :  { %542 = vst [vmem:[%s661_s3] sm:$0x3f] %v541_v40 }
  0xfd   :  { %560 = vsyncpa [#allocation3], 1 }

</bundles_post_ra>
